<compile_context>
chip_gen: v7x
topology: tpu7x:2x2x1
jax: 0.10.0
libtpu: 0.0.40
codegen_flags: <defaults>
</compile_context>

<pallas_src>
import jax
import jax.numpy as jnp
from jax import lax
from jax.experimental import pallas as pl
from jax.experimental.pallas import tpu as pltpu


def down_shifted_deconv2d_pallas(x_nchw, v, g, bias, *, filter_size=(2, 3),
                                 stride=(2, 2), output_padding=1, row_tile=8,
                                 compute_dtype=None):
    kH, kW = filter_size
    sH, sW = stride
    assert (kH, kW) == (2, 3) and (sH, sW) == (2, 2) and output_padding == 1, (
        "polyphase kernel is specialized to filter_size=(2,3), stride=(2,2), "
        "output_padding=1 (the only configuration the PyTorch module can run)")

    N, Cin, H, W = x_nchw.shape
    Cout = v.shape[1]
    orig_dtype = x_nchw.dtype

    # ---- weight norm (XLA glue): w = g * v / ||v||, norm over dims (1,2,3) (wn dim=0) ----
    w = g * v / jnp.sqrt(jnp.sum(v * v, axis=(1, 2, 3), keepdims=True))   # (Cin,Cout,2,3)

    if compute_dtype is not None:
        w = w.astype(compute_dtype)
        x_nchw = x_nchw.astype(compute_dtype)

    # ---- pack polyphase weights: (2*kH, Cin, 2*Cout), entry [2*kh + j] ----
    #  j = 0: taps applied to x[m, n]     -> [even-col tap kw=1 | odd-col tap kw=2]
    #  j = 1: taps applied to x[m, n + 1] -> [zeros             | odd-col tap kw=0]
    zeros_cc = jnp.zeros((Cin, Cout), w.dtype)
    taps = []
    for kh in range(kH):
        taps.append(jnp.concatenate([w[:, :, kh, 1], w[:, :, kh, 2]], axis=1))
        taps.append(jnp.concatenate([zeros_cc, w[:, :, kh, 0]], axis=1))
    w_pack = jnp.stack(taps, axis=0)                                      # (4, Cin, 2*Cout)

    # bias duplicated for both column phases, kept in f32 for the f32 accumulator.
    bias2 = jnp.concatenate([bias, bias], axis=0).reshape(1, 2 * Cout).astype(jnp.float32)

    # ---- NCHW -> NHWC (channels on the lane axis) + tiny halo/row padding ----
    # TODO(synk): if the surrounding model runs NHWC end-to-end, both layout transposes
    # around this call can be dropped.
    rt = max(1, min(row_tile, H))
    H_pad = ((H + rt - 1) // rt) * rt
    x_nhwc = jnp.transpose(x_nchw, (0, 2, 3, 1))
    # one zero column of halo (for the x[m, n+1] taps at n = W-1) + row-tile remainder.
    x_pad = jnp.pad(x_nhwc, ((0, 0), (0, H_pad - H), (0, 1), (0, 0)))     # (N,H_pad,W+1,Cin)
    n_row_tiles = H_pad // rt
    M = rt * W

    def kernel(x_ref, w_ref, b_ref, o_ref):
        # x_ref: (rt, W+1, Cin)   input rows of this tile + zero halo column
        # w_ref: (4, Cin, 2*Cout) packed polyphase taps (resident across the grid)
        # b_ref: (1, 2*Cout)      bias, duplicated per column phase
        # o_ref: (2*rt, W, 2*Cout) rows interleaved as (input row, kh); lanes = (phase, Cout)
        xf = x_ref[...]
        x_cur = xf[:, :W, :].reshape(M, Cin)      # x[m, n]
        x_nxt = xf[:, 1:, :].reshape(M, Cin)      # x[m, n+1] (zero past the right edge)
        bias_b = jnp.broadcast_to(b_ref[...].astype(jnp.float32), (M, 2 * Cout))  # hoisted
        rows = []
        for kh in range(2):                       # static unroll over the 2 kernel rows
            acc = jnp.dot(x_cur, w_ref[2 * kh], preferred_element_type=jnp.float32)
            acc = acc + jnp.dot(x_nxt, w_ref[2 * kh + 1],
                                preferred_element_type=jnp.float32)
            rows.append((acc + bias_b).reshape(rt, 1, W, 2 * Cout))
        out_tile = jnp.concatenate(rows, axis=1).reshape(2 * rt, W, 2 * Cout)
        o_ref[...] = out_tile.astype(o_ref.dtype)  # single lane-dense full-block store

    # ---- VMEM budget hint derived from the actual tiling (leave generous headroom) ----
    esz_in = x_pad.dtype.itemsize
    esz_out = jnp.dtype(orig_dtype).itemsize
    in_blk = rt * (W + 1) * Cin * esz_in
    out_blk = 2 * rt * W * 2 * Cout * esz_out
    w_bytes = int(w_pack.size) * w_pack.dtype.itemsize
    est = 2 * (in_blk + out_blk) + w_bytes + 2 * Cout * 4
    vmem_limit = int(min(48 * 2 ** 20, max(16 * 2 ** 20, 4 * est)))

    out4 = pl.pallas_call(
        kernel,
        out_shape=jax.ShapeDtypeStruct((N, 2 * H_pad, W, 2 * Cout), orig_dtype),
        grid_spec=pltpu.PrefetchScalarGridSpec(
            num_scalar_prefetch=0,
            grid=(N, n_row_tiles),
            in_specs=[
                pl.BlockSpec((None, rt, W + 1, Cin), lambda b, r: (b, r, 0, 0)),
                pl.BlockSpec((2 * kH, Cin, 2 * Cout), lambda b, r: (0, 0, 0)),
                pl.BlockSpec((1, 2 * Cout), lambda b, r: (0, 0)),
            ],
            out_specs=pl.BlockSpec((None, 2 * rt, W, 2 * Cout),
                                   lambda b, r: (b, r, 0, 0)),
        ),
        compiler_params=pltpu.CompilerParams(
            dimension_semantics=("parallel", "parallel"),
            vmem_limit_bytes=vmem_limit),
    )(x_pad, w_pack, bias2)

    # (N, 2*H_pad, W, 2*Cout) -> (N, 2*H_pad, 2*W, Cout): free reshape (lanes were (p, co)).
    out = out4.reshape(N, 2 * H_pad, 2 * W, Cout)
    if H_pad != H:
        out = out[:, :2 * H]
    return jnp.transpose(out, (0, 3, 1, 2))                               # back to NCHW


if __name__ == "__main__":
    N, Cin, Cout, H, W = 2, 4, 8, 16, 16
    filter_size, stride, op = (2, 3), (2, 2), 1

    key = jax.random.PRNGKey(0)
    k1, k2, k3 = jax.random.split(key, 3)
    x = jax.random.normal(k1, (N, Cin, H, W), jnp.float32)
    # weight_norm params: v (direction) and g (= ||v|| at init, as PyTorch does)
    v = 0.05 * jax.random.normal(k2, (Cin, Cout, *filter_size), jnp.float32)
    g = jnp.sqrt(jnp.sum(v * v, axis=(1, 2, 3), keepdims=True))           # (Cin,1,1,1)
    bias = 0.1 * jax.random.normal(k3, (Cout,), jnp.float32)

    out = down_shifted_deconv2d_pallas(x, v, g, bias, filter_size=filter_size,
                                       stride=stride, output_padding=op, row_tile=8)
    out = jax.block_until_ready(out)

    # Independent XLA reference: conv_transpose via lhs-dilated conv + same crop.
    kH, kW = filter_size
    w_eff = g * v / jnp.sqrt(jnp.sum(v * v, axis=(1, 2, 3), keepdims=True))
    w_oihw = jnp.flip(w_eff, axis=(2, 3)).transpose(1, 0, 2, 3)           # (Cout,Cin,kH,kW)
    full = lax.conv_general_dilated(
        x, w_oihw, window_strides=(1, 1),
        padding=[(kH - 1, kH - 1 + op), (kW - 1, kW - 1 + op)],
        lhs_dilation=stride,
        dimension_numbers=('NCHW', 'OIHW', 'NCHW'))
    full = full + bias.reshape(1, Cout, 1, 1)
    Ho, Wo = full.shape[2], full.shape[3]
    cw = (kW - 1) // 2
    ref = full[:, :, :Ho - kH + 1, cw:Wo - cw]

    assert out.shape == ref.shape == (N, Cout, 2 * H, 2 * W), (out.shape, ref.shape)
    max_err = float(jnp.max(jnp.abs(out - ref)))
    assert jnp.allclose(out, ref, atol=1e-5, rtol=1e-5), max_err
    print("KERNEL_OK")
</pallas_src>

<mosaic_0001>
module attributes {stable_mosaic.version = 11 : i64} {
  func.func @kernel(%arg0: i32, %arg1: i32, %arg2: memref<1x8x17x4xf32, #tpu.memory_space<vmem>>, %arg3: memref<4x4x16xf32, #tpu.memory_space<vmem>>, %arg4: memref<1x16xf32, #tpu.memory_space<vmem>>, %arg5: memref<1x16x16x16xf32, #tpu.memory_space<vmem>>) attributes {dimension_semantics = [#tpu.dimension_semantics<parallel>, #tpu.dimension_semantics<parallel>], iteration_bounds = array<i64: 2, 2>, scalar_prefetch = 0 : i64, scratch_operands = 0 : i64, tpu.core_type = #tpu.core_type<tc>, window_params = [{transform_indices = @transform_0, window_bounds = array<i64: 1, 8, 17, 4>}, {pipeline_mode = #tpu.pipeline_mode<synchronous>, transform_indices = @transform_1, window_bounds = array<i64: 4, 4, 16>}, {pipeline_mode = #tpu.pipeline_mode<synchronous>, transform_indices = @transform_2, window_bounds = array<i64: 1, 16>}, {transform_indices = @transform_3, window_bounds = array<i64: 1, 16, 16, 16>}]} {
    %c0 = arith.constant 0 : index
    %c0_0 = arith.constant 0 : index
    %c0_1 = arith.constant 0 : index
    %c0_2 = arith.constant 0 : index
    %0 = vector.load %arg2[%c0, %c0_0, %c0_1, %c0_2] : memref<1x8x17x4xf32, #tpu.memory_space<vmem>>, vector<1x8x17x4xf32>
    %1 = vector.shape_cast %0 : vector<1x8x17x4xf32> to vector<8x17x4xf32>
    %2 = vector.extract_strided_slice %1 {offsets = [0, 0, 0], sizes = [8, 16, 4], strides = [1, 1, 1]} : vector<8x17x4xf32> to vector<8x16x4xf32>
    %3 = vector.shape_cast %2 : vector<8x16x4xf32> to vector<128x4xf32>
    %4 = vector.extract_strided_slice %1 {offsets = [0, 1, 0], sizes = [8, 16, 4], strides = [1, 1, 1]} : vector<8x17x4xf32> to vector<8x16x4xf32>
    %5 = vector.shape_cast %4 : vector<8x16x4xf32> to vector<128x4xf32>
    %c0_3 = arith.constant 0 : index
    %c0_4 = arith.constant 0 : index
    %6 = vector.load %arg4[%c0_3, %c0_4] : memref<1x16xf32, #tpu.memory_space<vmem>>, vector<1x16xf32>
    %7 = vector.shape_cast %6 : vector<1x16xf32> to vector<1x16xf32>
    %8 = vector.broadcast %7 : vector<1x16xf32> to vector<128x16xf32>
    %c0_5 = arith.constant 0 : index
    %c0_6 = arith.constant 0 : index
    %c0_7 = arith.constant 0 : index
    %9 = vector.load %arg3[%c0_5, %c0_6, %c0_7] : memref<4x4x16xf32, #tpu.memory_space<vmem>>, vector<1x4x16xf32>
    %10 = vector.shape_cast %9 : vector<1x4x16xf32> to vector<4x16xf32>
    %cst = arith.constant dense<0.000000e+00> : vector<128x16xf32>
    %11 = tpu.matmul %3, %10, %cst {dimension_numbers = #tpu.dot_dimension_numbers<[1], [0], [0], [1], [0, 0, 1, 1], [], []>} : vector<128x4xf32>, vector<4x16xf32>, vector<128x16xf32> -> vector<128x16xf32>
    %c1 = arith.constant 1 : index
    %c0_8 = arith.constant 0 : index
    %c0_9 = arith.constant 0 : index
    %12 = vector.load %arg3[%c1, %c0_8, %c0_9] : memref<4x4x16xf32, #tpu.memory_space<vmem>>, vector<1x4x16xf32>
    %13 = vector.shape_cast %12 : vector<1x4x16xf32> to vector<4x16xf32>
    %cst_10 = arith.constant dense<0.000000e+00> : vector<128x16xf32>
    %14 = tpu.matmul %5, %13, %cst_10 {dimension_numbers = #tpu.dot_dimension_numbers<[1], [0], [0], [1], [0, 0, 1, 1], [], []>} : vector<128x4xf32>, vector<4x16xf32>, vector<128x16xf32> -> vector<128x16xf32>
    %15 = arith.addf %11, %14 : vector<128x16xf32>
    %16 = arith.addf %15, %8 : vector<128x16xf32>
    %17 = vector.shape_cast %16 : vector<128x16xf32> to vector<8x1x16x16xf32>
    %c2 = arith.constant 2 : index
    %c0_11 = arith.constant 0 : index
    %c0_12 = arith.constant 0 : index
    %18 = vector.load %arg3[%c2, %c0_11, %c0_12] : memref<4x4x16xf32, #tpu.memory_space<vmem>>, vector<1x4x16xf32>
    %19 = vector.shape_cast %18 : vector<1x4x16xf32> to vector<4x16xf32>
    %cst_13 = arith.constant dense<0.000000e+00> : vector<128x16xf32>
    %20 = tpu.matmul %3, %19, %cst_13 {dimension_numbers = #tpu.dot_dimension_numbers<[1], [0], [0], [1], [0, 0, 1, 1], [], []>} : vector<128x4xf32>, vector<4x16xf32>, vector<128x16xf32> -> vector<128x16xf32>
    %c3 = arith.constant 3 : index
    %c0_14 = arith.constant 0 : index
    %c0_15 = arith.constant 0 : index
    %21 = vector.load %arg3[%c3, %c0_14, %c0_15] : memref<4x4x16xf32, #tpu.memory_space<vmem>>, vector<1x4x16xf32>
    %22 = vector.shape_cast %21 : vector<1x4x16xf32> to vector<4x16xf32>
    %cst_16 = arith.constant dense<0.000000e+00> : vector<128x16xf32>
    %23 = tpu.matmul %5, %22, %cst_16 {dimension_numbers = #tpu.dot_dimension_numbers<[1], [0], [0], [1], [0, 0, 1, 1], [], []>} : vector<128x4xf32>, vector<4x16xf32>, vector<128x16xf32> -> vector<128x16xf32>
    %24 = arith.addf %20, %23 : vector<128x16xf32>
    %25 = arith.addf %24, %8 : vector<128x16xf32>
    %26 = vector.shape_cast %25 : vector<128x16xf32> to vector<8x1x16x16xf32>
    %27 = tpu.concatenate %17, %26 in 1 : vector<8x1x16x16xf32>, vector<8x1x16x16xf32> -> vector<8x2x16x16xf32>
    %28 = vector.shape_cast %27 : vector<8x2x16x16xf32> to vector<16x16x16xf32>
    %c0_17 = arith.constant 0 : index
    %c0_18 = arith.constant 0 : index
    %c0_19 = arith.constant 0 : index
    %c0_20 = arith.constant 0 : index
    %29 = vector.load %arg5[%c0_17, %c0_18, %c0_19, %c0_20] : memref<1x16x16x16xf32, #tpu.memory_space<vmem>>, vector<1x16x16x16xf32>
    %30 = vector.shape_cast %29 : vector<1x16x16x16xf32> to vector<16x16x16xf32>
    %31 = vector.shape_cast %28 : vector<16x16x16xf32> to vector<1x16x16x16xf32>
    tpu.vector_store %arg5[%c0_17, %c0_18, %c0_19, %c0_20], %31 {strides = array<i32>} : memref<1x16x16x16xf32, #tpu.memory_space<vmem>>, vector<1x16x16x16xf32>,
    return
  }
  func.func @transform_0(%arg0: i32, %arg1: i32) -> (i32, i32, i32, i32) {
    %c0_i32 = arith.constant 0 : i32
    %c0_i32_0 = arith.constant 0 : i32
    %c0_i32_1 = arith.constant 0 : i32
    return %arg0, %arg1, %c0_i32, %c0_i32_0 : i32, i32, i32, i32
  }
  func.func @transform_1(%arg0: i32, %arg1: i32) -> (i32, i32, i32) {
    %c0_i32 = arith.constant 0 : i32
    %c0_i32_0 = arith.constant 0 : i32
    %c0_i32_1 = arith.constant 0 : i32
    %c0_i32_2 = arith.constant 0 : i32
    return %c0_i32, %c0_i32_0, %c0_i32_1 : i32, i32, i32
  }
  func.func @transform_2(%arg0: i32, %arg1: i32) -> (i32, i32) {
    %c0_i32 = arith.constant 0 : i32
    %c0_i32_0 = arith.constant 0 : i32
    %c0_i32_1 = arith.constant 0 : i32
    return %c0_i32, %c0_i32_0 : i32, i32
  }
  func.func @transform_3(%arg0: i32, %arg1: i32) -> (i32, i32, i32, i32) {
    %c0_i32 = arith.constant 0 : i32
    %c0_i32_0 = arith.constant 0 : i32
    %c0_i32_1 = arith.constant 0 : i32
    return %arg0, %arg1, %c0_i32, %c0_i32_0 : i32, i32, i32, i32
  }
}

</mosaic_0001>

<bundles_post_ra>
// kernel: tpu_custom_call.1
= control target key start
LH: loop header
LB: loop body
LE: loop exit
PB: predicated region body
PF: predicated region fallthrough
CT: control target
= control target key end

     0   :  { %s1531_s12 = smov 0   ;;  %s1533_s13 = smov 0   ;;  %s1889_s0 = inlined_call_operand.vmem [shape: f32[2,16,17,4], index: 0, kind: input, shape index: {}]   ;;  %s1890_s1 = inlined_call_operand.vmem [shape: f32[4,4,16], index: 1, kind: input, shape index: {}]   ;;  %s1891_s2 = inlined_call_operand.vmem [shape: f32[1,16], index: 2, kind: input, shape index: {}]   ;;  %s1892_s3 = inlined_call_operand.vmem [shape: f32[2,32,16,16], index: 3, kind: output, shape index: {}]  }
   0x1   :  { %s1535_s14 = smov 0   ;;  %s1537_s15 = smov 0  }
   0x2   :  { %s1539_s16 = smov 0  }
   0x3 LB: > { %s22_s17 = sadd.s32 1, %s1501_s14  ;;  %s25_s18 = sadd.s32 1, %s1505_s15  ;;  %s1509_s16 = sphi %s1539_s16, %s13_s16   ;;  %s1505_s15 = sphi %s1537_s15, %s1896_s15   ;;  %s1501_s14 = sphi %s1535_s14, %s1895_s14   ;;  %s1497_s13 = sphi %s1533_s13, %s1894_s13   ;;  %s1493_s12 = sphi %s1531_s12, %s1893_s12  }
   0x4   : > { %p23_p0 = scmp.ge.s32.totalorder %s22_s17, 2  ;;  %p1144_p1 = scmp.ge.s32.totalorder %s1509_s16, 1 }
   0x5   : > { %p159_p2 = scmp.lt.s32.totalorder %s1509_s16, 5 }
   0x6   : > { %s1898_s17 = smov (%p23_p0, %s22_s17), 0  ;;  %s1900_s18 = smov (!%p23_p0, %s25_s18), %s1505_s15 }
   0x7   : > { %p160_p3 = pnand %p1144_p1, %p159_p2  ;;  %p27_p4 = scmp.ge.s32.totalorder %s1900_s18, 2 }
   0x8   : > { %v1152_v0 = vld [vmem:[%s1890_s1 + $0x4] sm:$0xf] (!%p160_p3)  ;;  %vm347_vm0 = vcmask (!%p160_p3), 1043456   ;;  %v1188_v1 = vld [vmem:[%s1890_s1 + $0xc] sm:$0xf] (!%p160_p3)  ;;  %s1145_s23 = sshll.u32 (!%p160_p3), %s1493_s12, 3 }
   0x9   : > { %s1902_s18 = smov (%p27_p4, %s1900_s18), 0  ;;  %163 = sbr.rel (%p160_p3) target bundleno = 304 (0x130), region = 32 }
   0xa   : > { %1293 = vmatprep.subr.msk.mxu0 (!%p160_p3), %vm347_vm0, %v1152_v0  ;;  %1345 = vmatprep.subr.msk.mxu1 (!%p160_p3), %vm347_vm0, %v1188_v1  ;;  %p194_p5 = scmp.lt.s32.totalorder (!%p160_p3), %s1497_s13, 1  ;;  %p196_p6 = scmp.lt.s32.totalorder (!%p160_p3), %s1145_s23, 15  ;;  %v311_v2 = vld [vmem:[%s1890_s1] sm:$0xf] (!%p160_p3)  ;;  %v1187_v3 = vld [vmem:[%s1890_s1 + $0x8] sm:$0xf] (!%p160_p3) }
   0xb   : > { %1294 = vmatpush3.msk.msra.mxu0 (!%p160_p3), %vm347_vm0, %v1152_v0  ;;  %1346 = vmatpush3.msk.msra.mxu1 (!%p160_p3), %vm347_vm0, %v1188_v1  ;;  %vm263_vm1 = vcmask (!%p160_p3), 1046528   ;;  %vm314_vm2 = vcmask (!%p160_p3), 31744   ;;  %s1147_s8 = sshll.u32 (!%p160_p3), %s1493_s12, 4  ;;  %vm1008_vm3 = vcmask (!%p160_p3), 130048  }
   0xc   : > { %1319 = vmatprep.subr.msk.mxu0 (!%p160_p3), %vm347_vm0, %v311_v2  ;;  %1371 = vmatprep.subr.msk.mxu1 (!%p160_p3), %vm347_vm0, %v1187_v3  ;;  %p207_p7 = scmp.lt.s32.totalorder (!%p160_p3), %s1147_s8, 31 }
  0x10   : > { %s1904_s13 = smov (!%p194_p5, %s1497_s13), 1  ;;  %s1906_s23 = smov (!%p196_p6, %s1145_s23), 15 }
  0x11   : > { %s1430_s28 = smul.u32 48, %s1904_s13  ;;  %s1908_s8 = smov (!%p207_p7, %s1147_s8), 31 }
  0x12   : > { %s1429_s29 = smul.u32 3, %s1906_s23  ;;  %s1148_s9 = sshll.u32 %s1908_s8, 1 }
  0x13   : > { %s1149_s10 = sshll.u32 %s1904_s13, 6 }
  0x14   : > { %s200_s30 = sadd.s32 %s1430_s28, %s1429_s29  ;;  %s211_s11 = sadd.s32 %s1149_s10, %s1148_s9 }
  0x15   : > { %s1146_s4 = sshll.u32 %s200_s30, 3  ;;  %s1150_s19 = sshll.u32 %s211_s11, 3 }
  0x16   : > { %s1588_s7 = scalar_lea.vmem %s1889_s0, %s1146_s4  ;;  %s1776_s24 = scalar_lea.vmem %s1892_s3, %s1150_s19 }
  0x17   : > { %v1591_v4 = vld [vmem:[%s1588_s7] sm:$0xff]  ;;  %v1594_v5 = vld [vmem:[%s1588_s7 + $0x8] sm:$0xff]  ;;  %v217_v6 = vld [vmem:[%s1588_s7 + $0x10] sm:$0x1] }
  0x18   : > { %v264_v7 = vrot.slane %v1591_v4, 1  ;;  %v265_v8 = vrot.slane %v1594_v5, 1  ;;  %v267_v9 = vrot.slane %v217_v6, 1  ;;  %v1600_v10 = vld [vmem:[%s1588_s7 + $0x18] sm:$0xff]  ;;  %v1603_v11 = vld [vmem:[%s1588_s7 + $0x20] sm:$0xff]  ;;  %v1606_v12 = vld [vmem:[%s1588_s7 + $0x30] sm:$0xff] }
  0x19   : > { %v269_v13 = vrot.slane %v1600_v10, 1  ;;  %v270_v14 = vrot.slane %v1603_v11, 1  ;;  %v220_v15 = vld [vmem:[%s1588_s7 + $0x28] sm:$0x1]  ;;  %v1612_v16 = vld [vmem:[%s1588_s7 + $0x38] sm:$0xff]  ;;  %v274_v17 = vrot.slane %v1606_v12, 1 }
  0x1a   : > { %v266_v18 = vsel %vm263_vm1, %v264_v7, %v265_v8  ;;  %v268_v19 = vsel %vm263_vm1, %v265_v8, %v267_v9  ;;  %v272_v20 = vrot.slane %v220_v15, 1  ;;  %v275_v21 = vrot.slane %v1612_v16, 1  ;;  %v223_v22 = vld [vmem:[%s1588_s7 + $0x40] sm:$0x1]  ;;  %v1623_v24 = vld [vmem:[%s1588_s7 + $0x48] sm:$0xff]  ;;  %v1626_v25 = vld [vmem:[%s1588_s7 + $0x50] sm:$0xff] }
  0x1b   : > { %1295 = vmatprep.mubr.msk.f32.mxu0 %vm314_vm2, %v266_v18  ;;  %1347 = vmatprep.mubr.msk.f32.mxu1 %vm314_vm2, %v266_v18  ;;  %v271_v23 = vsel %vm263_vm1, %v269_v13, %v270_v14  ;;  %v277_v27 = vrot.slane %v223_v22, 1  ;;  %v279_v29 = vrot.slane %v1623_v24, 1  ;;  %v280_v30 = vrot.slane %v1626_v25, 1  ;;  %v226_v31 = vld [vmem:[%s1588_s7 + $0x58] sm:$0x1]  ;;  %v1640_v32 = vld [vmem:[%s1588_s7 + $0x60] sm:$0xff] }
  0x1c   : > { %1296 = vmatmul.mubr.msk.f32.vlgmr.msra.gmra.mrb[0].mxu0 %vm314_vm2, %v268_v19  ;;  %1348 = vmatmul.mubr.msk.f32.vlgmr.msra.gmra.mrb[0].mxu1 %vm314_vm2, %v268_v19  ;;  %v273_v26 = vsel %vm263_vm1, %v270_v14, %v272_v20  ;;  %v276_v28 = vsel %vm263_vm1, %v274_v17, %v275_v21  ;;  %v1643_v33 = vld [vmem:[%s1588_s7 + $0x68] sm:$0xff]  ;;  %v282_v35 = vrot.slane %v226_v31, 1  ;;  %v284_v37 = vrot.slane %v1640_v32, 1  ;;  %v229_v39 = vld [vmem:[%s1588_s7 + $0x70] sm:$0x1]  ;;  %v1655_v40 = vld [vmem:[%s1588_s7 + $0x78] sm:$0xff] }
  0x1d   : > { %1320 = vmatpush3.msk.msra.mxu0 %vm347_vm0, %v311_v2  ;;  %1372 = vmatpush3.msk.msra.mxu1 %vm347_vm0, %v1187_v3  ;;  %v278_v34 = vsel %vm263_vm1, %v275_v21, %v277_v27  ;;  %v281_v36 = vsel %vm263_vm1, %v279_v29, %v280_v30  ;;  %v285_v38 = vrot.slane %v1643_v33, 1  ;;  %v1658_v41 = vld [vmem:[%s1588_s7 + $0x80] sm:$0xff]  ;;  %v287_v43 = vrot.slane %v229_v39, 1  ;;  %v232_v47 = vld [vmem:[%s1588_s7 + $0x88] sm:$0x1]  ;;  %v1670_v48 = vld [vmem:[%s1588_s7 + $0x90] sm:$0xff] }
  0x1e   : > { %1298 = vmatprep.mubr.msk.f32.mxu0 %vm314_vm2, %v271_v23  ;;  %1350 = vmatprep.mubr.msk.f32.mxu1 %vm314_vm2, %v271_v23  ;;  %v283_v42 = vsel %vm263_vm1, %v280_v30, %v282_v35  ;;  %v289_v45 = vrot.slane %v1655_v40, 1  ;;  %v290_v46 = vrot.slane %v1658_v41, 1  ;;  %v1673_v49 = vld [vmem:[%s1588_s7 + $0x98] sm:$0xff]  ;;  %v292_v51 = vrot.slane %v232_v47, 1  ;;  %v235_v55 = vld [vmem:[%s1588_s7 + $0xa0] sm:$0x1] }
  0x1f   : > { %v286_v44 = vsel %vm263_vm1, %v284_v37, %v285_v38  ;;  %v288_v50 = vsel %vm263_vm1, %v285_v38, %v287_v43  ;;  %v294_v53 = vrot.slane %v1670_v48, 1  ;;  %v295_v54 = vrot.slane %v1673_v49, 1  ;;  %v236_v56 = vld [vmem:[%s1588_s7 + $0xa8] sm:$0xff]  ;;  %v237_v57 = vld [vmem:[%s1588_s7 + $0xb0] sm:$0xff]  ;;  %v238_v63 = vld [vmem:[%s1588_s7 + $0xb8] sm:$0x1] }
  0x20   : > { %1299 = vmatmul.mubr.msk.f32.gmra.mrb[2].mxu0 %vm314_vm2, %v273_v26  ;;  %1351 = vmatmul.mubr.msk.f32.gmra.mrb[2].mxu1 %vm314_vm2, %v273_v26  ;;  %v291_v52 = vsel %vm263_vm1, %v289_v45, %v290_v46  ;;  %v293_v58 = vsel %vm263_vm1, %v290_v46, %v292_v51  ;;  %v297_v59 = vrot.slane %v235_v55, 1  ;;  %v299_v61 = vrot.slane %v236_v56, 1 }
  0x21   : > { %1301 = vmatprep.mubr.msk.f32.mxu0 %vm314_vm2, %v276_v28  ;;  %1353 = vmatprep.mubr.msk.f32.mxu1 %vm314_vm2, %v276_v28  ;;  %v296_v60 = vsel %vm263_vm1, %v294_v53, %v295_v54  ;;  %v300_v62 = vrot.slane %v237_v57, 1  ;;  %v302_v1 = vrot.slane %v238_v63, 1 }
  0x22   : > { %v298_v0 = vsel %vm263_vm1, %v295_v54, %v297_v59 }
  0x23   : > { %v301_v2 = vsel %vm263_vm1, %v299_v61, %v300_v62  ;;  %v303_v3 = vsel %vm263_vm1, %v300_v62, %v302_v1 }
  0x24   : > { %1302 = vmatmul.mubr.msk.f32.gmra.mrb[4].mxu0 %vm314_vm2, %v278_v34  ;;  %1354 = vmatmul.mubr.msk.f32.gmra.mrb[4].mxu1 %vm314_vm2, %v278_v34 }
  0x25   : > { %1304 = vmatprep.mubr.msk.f32.mxu0 %vm314_vm2, %v281_v36  ;;  %1356 = vmatprep.mubr.msk.f32.mxu1 %vm314_vm2, %v281_v36 }
  0x28   : > { %1305 = vmatmul.mubr.msk.f32.gmra.mrb[6].mxu0 %vm314_vm2, %v283_v42  ;;  %1357 = vmatmul.mubr.msk.f32.gmra.mrb[6].mxu1 %vm314_vm2, %v283_v42 }
  0x29   : > { %1307 = vmatprep.mubr.msk.f32.mxu0 %vm314_vm2, %v286_v44  ;;  %1359 = vmatprep.mubr.msk.f32.mxu1 %vm314_vm2, %v286_v44 }
  0x2c   : > { %1308 = vmatmul.mubr.msk.f32.gmra.mrb[8].mxu0 %vm314_vm2, %v288_v50  ;;  %1360 = vmatmul.mubr.msk.f32.gmra.mrb[8].mxu1 %vm314_vm2, %v288_v50 }
  0x2d   : > { %1310 = vmatprep.mubr.msk.f32.mxu0 %vm314_vm2, %v291_v52  ;;  %1362 = vmatprep.mubr.msk.f32.mxu1 %vm314_vm2, %v291_v52 }
  0x30   : > { %1311 = vmatmul.mubr.msk.f32.gmra.mrb[10].mxu0 %vm314_vm2, %v293_v58  ;;  %1363 = vmatmul.mubr.msk.f32.gmra.mrb[10].mxu1 %vm314_vm2, %v293_v58 }
  0x31   : > { %1313 = vmatprep.mubr.msk.f32.mxu0 %vm314_vm2, %v296_v60  ;;  %1365 = vmatprep.mubr.msk.f32.mxu1 %vm314_vm2, %v296_v60 }
  0x34   : > { %1314 = vmatmul.mubr.msk.f32.gmra.mrb[12].mxu0 %vm314_vm2, %v298_v0  ;;  %1366 = vmatmul.mubr.msk.f32.gmra.mrb[12].mxu1 %vm314_vm2, %v298_v0 }
  0x35   : > { %1316 = vmatprep.mubr.msk.f32.mxu0 %vm314_vm2, %v301_v2  ;;  %1368 = vmatprep.mubr.msk.f32.mxu1 %vm314_vm2, %v301_v2 }
  0x38   : > { %1317 = vmatmul.mubr.msk.f32.gmra.mrb[14].mxu0 %vm314_vm2, %v303_v3  ;;  %1369 = vmatmul.mubr.msk.f32.gmra.mrb[14].mxu1 %vm314_vm2, %v303_v3 }
  0x39   : > { %1321 = vmatprep.mubr.msk.f32.mxu0 %vm314_vm2, %v1591_v4  ;;  %1373 = vmatprep.mubr.msk.f32.mxu1 %vm314_vm2, %v1591_v4  ;;  %v1771_v4 = vld [vmem:[%s1891_s2] ss:$0 sm:$0xff] }
  0x3c   : > { %1322 = vmatmul.mubr.msk.f32.vlgmr.msra.gmra.mrb[0].mxu0 %vm314_vm2, %v1594_v5  ;;  %1374 = vmatmul.mubr.msk.f32.vlgmr.msra.gmra.mrb[0].mxu1 %vm314_vm2, %v1594_v5 }
  0x3d   : > { %1324 = vmatprep.mubr.msk.f32.mxu0 %vm314_vm2, %v1600_v10  ;;  %1376 = vmatprep.mubr.msk.f32.mxu1 %vm314_vm2, %v1600_v10 }
  0x40   : > { %1325 = vmatmul.mubr.msk.f32.gmra.mrb[2].mxu0 %vm314_vm2, %v1603_v11  ;;  %1377 = vmatmul.mubr.msk.f32.gmra.mrb[2].mxu1 %vm314_vm2, %v1603_v11 }
  0x41   : > { %1327 = vmatprep.mubr.msk.f32.mxu0 %vm314_vm2, %v1606_v12  ;;  %1379 = vmatprep.mubr.msk.f32.mxu1 %vm314_vm2, %v1606_v12 }
  0x44   : > { %1328 = vmatmul.mubr.msk.f32.gmra.mrb[4].mxu0 %vm314_vm2, %v1612_v16  ;;  %1380 = vmatmul.mubr.msk.f32.gmra.mrb[4].mxu1 %vm314_vm2, %v1612_v16 }
  0x45   : > { %1330 = vmatprep.mubr.msk.f32.mxu0 %vm314_vm2, %v1623_v24  ;;  %1382 = vmatprep.mubr.msk.f32.mxu1 %vm314_vm2, %v1623_v24 }
  0x48   : > { %1331 = vmatmul.mubr.msk.f32.gmra.mrb[6].mxu0 %vm314_vm2, %v1626_v25  ;;  %1383 = vmatmul.mubr.msk.f32.gmra.mrb[6].mxu1 %vm314_vm2, %v1626_v25 }
  0x49   : > { %1333 = vmatprep.mubr.msk.f32.mxu0 %vm314_vm2, %v1640_v32  ;;  %1385 = vmatprep.mubr.msk.f32.mxu1 %vm314_vm2, %v1640_v32 }
  0x4c   : > { %1334 = vmatmul.mubr.msk.f32.gmra.mrb[8].mxu0 %vm314_vm2, %v1643_v33  ;;  %1386 = vmatmul.mubr.msk.f32.gmra.mrb[8].mxu1 %vm314_vm2, %v1643_v33 }
  0x4d   : > { %1336 = vmatprep.mubr.msk.f32.mxu0 %vm314_vm2, %v1655_v40  ;;  %1388 = vmatprep.mubr.msk.f32.mxu1 %vm314_vm2, %v1655_v40 }
  0x50   : > { %1337 = vmatmul.mubr.msk.f32.gmra.mrb[10].mxu0 %vm314_vm2, %v1658_v41  ;;  %1389 = vmatmul.mubr.msk.f32.gmra.mrb[10].mxu1 %vm314_vm2, %v1658_v41 }
  0x51   : > { %1339 = vmatprep.mubr.msk.f32.mxu0 %vm314_vm2, %v1670_v48  ;;  %1391 = vmatprep.mubr.msk.f32.mxu1 %vm314_vm2, %v1670_v48 }
  0x54   : > { %1340 = vmatmul.mubr.msk.f32.gmra.mrb[12].mxu0 %vm314_vm2, %v1673_v49  ;;  %1392 = vmatmul.mubr.msk.f32.gmra.mrb[12].mxu1 %vm314_vm2, %v1673_v49 }
  0x55   : > { %1342 = vmatprep.mubr.msk.f32.mxu0 %vm314_vm2, %v236_v56  ;;  %1394 = vmatprep.mubr.msk.f32.mxu1 %vm314_vm2, %v236_v56 }
  0x58   : > { %1343 = vmatmul.mubr.msk.f32.gmra.mrb[14].mxu0 %vm314_vm2, %v237_v57  ;;  %1395 = vmatmul.mubr.msk.f32.gmra.mrb[14].mxu1 %vm314_vm2, %v237_v57 }
 0x10f   : > { %v1323_v5 = vpop.f32.mrb[0].mxu0  ;;  %v1375_v6 = vpop.f32.mrb[0].mxu1 }
 0x110   : > { %v677_v7 = vadd.f32 %v1323_v5, %v1771_v4  ;;  %v993_v8 = vadd.f32 %v1375_v6, %v1771_v4  ;;  %v597_v9 = vpop.f32.mrb[1].mxu0  ;;  %v913_v10 = vpop.f32.mrb[1].mxu1 }
 0x111   : > { %v676_v11 = vadd.f32 %v1771_v4, %v597_v9  ;;  %v992_v12 = vadd.f32 %v1771_v4, %v913_v10 }
 0x112   : > { %1010 = vst.msk [vmem:[%s1776_s24 + $0x8] sm:$0xff] %vm1008_vm3, %v677_v7  ;;  %1012 = vst.msk [vmem:[%s1776_s24 + $0x18] sm:$0xff] %vm1008_vm3, %v993_v8 }
 0x113   : > { %1009 = vst.msk [vmem:[%s1776_s24] sm:$0xff] %vm1008_vm3, %v676_v11  ;;  %1011 = vst.msk [vmem:[%s1776_s24 + $0x10] sm:$0xff] %vm1008_vm3, %v992_v12  ;;  %v1326_v13 = vpop.f32.mrb[2].mxu0  ;;  %v1378_v14 = vpop.f32.mrb[2].mxu1 }
 0x114   : > { %v679_v15 = vadd.f32 %v1326_v13, %v1771_v4  ;;  %v995_v16 = vadd.f32 %v1378_v14, %v1771_v4  ;;  %v607_v17 = vpop.f32.mrb[3].mxu0  ;;  %v923_v18 = vpop.f32.mrb[3].mxu1 }
 0x115   : > { %v678_v19 = vadd.f32 %v1771_v4, %v607_v17  ;;  %v994_v20 = vadd.f32 %v1771_v4, %v923_v18 }
 0x116   : > { %1014 = vst.msk [vmem:[%s1776_s24 + $0x28] sm:$0xff] %vm1008_vm3, %v679_v15  ;;  %1016 = vst.msk [vmem:[%s1776_s24 + $0x38] sm:$0xff] %vm1008_vm3, %v995_v16 }
 0x117   : > { %1013 = vst.msk [vmem:[%s1776_s24 + $0x20] sm:$0xff] %vm1008_vm3, %v678_v19  ;;  %1015 = vst.msk [vmem:[%s1776_s24 + $0x30] sm:$0xff] %vm1008_vm3, %v994_v20  ;;  %v1329_v21 = vpop.f32.mrb[4].mxu0  ;;  %v1381_v22 = vpop.f32.mrb[4].mxu1 }
 0x118   : > { %v681_v23 = vadd.f32 %v1329_v21, %v1771_v4  ;;  %v997_v24 = vadd.f32 %v1381_v22, %v1771_v4  ;;  %v617_v25 = vpop.f32.mrb[5].mxu0  ;;  %v933_v26 = vpop.f32.mrb[5].mxu1 }
 0x119   : > { %v680_v27 = vadd.f32 %v1771_v4, %v617_v25  ;;  %v996_v28 = vadd.f32 %v1771_v4, %v933_v26 }
 0x11a   : > { %1018 = vst.msk [vmem:[%s1776_s24 + $0x48] sm:$0xff] %vm1008_vm3, %v681_v23  ;;  %1020 = vst.msk [vmem:[%s1776_s24 + $0x58] sm:$0xff] %vm1008_vm3, %v997_v24 }
 0x11b   : > { %1017 = vst.msk [vmem:[%s1776_s24 + $0x40] sm:$0xff] %vm1008_vm3, %v680_v27  ;;  %1019 = vst.msk [vmem:[%s1776_s24 + $0x50] sm:$0xff] %vm1008_vm3, %v996_v28  ;;  %v1332_v29 = vpop.f32.mrb[6].mxu0  ;;  %v1384_v30 = vpop.f32.mrb[6].mxu1 }
 0x11c   : > { %v683_v31 = vadd.f32 %v1332_v29, %v1771_v4  ;;  %v999_v32 = vadd.f32 %v1384_v30, %v1771_v4  ;;  %v627_v33 = vpop.f32.mrb[7].mxu0  ;;  %v943_v34 = vpop.f32.mrb[7].mxu1 }
 0x11d   : > { %v682_v35 = vadd.f32 %v1771_v4, %v627_v33  ;;  %v998_v36 = vadd.f32 %v1771_v4, %v943_v34 }
 0x11e   : > { %1022 = vst.msk [vmem:[%s1776_s24 + $0x68] sm:$0xff] %vm1008_vm3, %v683_v31  ;;  %1024 = vst.msk [vmem:[%s1776_s24 + $0x78] sm:$0xff] %vm1008_vm3, %v999_v32 }
 0x11f   : > { %1021 = vst.msk [vmem:[%s1776_s24 + $0x60] sm:$0xff] %vm1008_vm3, %v682_v35  ;;  %1023 = vst.msk [vmem:[%s1776_s24 + $0x70] sm:$0xff] %vm1008_vm3, %v998_v36  ;;  %v1335_v37 = vpop.f32.mrb[8].mxu0  ;;  %v1387_v38 = vpop.f32.mrb[8].mxu1 }
 0x120   : > { %v685_v39 = vadd.f32 %v1335_v37, %v1771_v4  ;;  %v1001_v40 = vadd.f32 %v1387_v38, %v1771_v4  ;;  %v637_v41 = vpop.f32.mrb[9].mxu0  ;;  %v953_v42 = vpop.f32.mrb[9].mxu1 }
 0x121   : > { %v684_v43 = vadd.f32 %v1771_v4, %v637_v41  ;;  %v1000_v44 = vadd.f32 %v1771_v4, %v953_v42 }
 0x122   : > { %1026 = vst.msk [vmem:[%s1776_s24 + $0x88] sm:$0xff] %vm1008_vm3, %v685_v39  ;;  %1028 = vst.msk [vmem:[%s1776_s24 + $0x98] sm:$0xff] %vm1008_vm3, %v1001_v40 }
 0x123   : > { %1025 = vst.msk [vmem:[%s1776_s24 + $0x80] sm:$0xff] %vm1008_vm3, %v684_v43  ;;  %1027 = vst.msk [vmem:[%s1776_s24 + $0x90] sm:$0xff] %vm1008_vm3, %v1000_v44  ;;  %v1338_v45 = vpop.f32.mrb[10].mxu0  ;;  %v1390_v46 = vpop.f32.mrb[10].mxu1 }
 0x124   : > { %v687_v47 = vadd.f32 %v1338_v45, %v1771_v4  ;;  %v1003_v48 = vadd.f32 %v1390_v46, %v1771_v4  ;;  %v647_v49 = vpop.f32.mrb[11].mxu0  ;;  %v963_v50 = vpop.f32.mrb[11].mxu1 }
 0x125   : > { %v686_v51 = vadd.f32 %v1771_v4, %v647_v49  ;;  %v1002_v52 = vadd.f32 %v1771_v4, %v963_v50 }
 0x126   : > { %1030 = vst.msk [vmem:[%s1776_s24 + $0xa8] sm:$0xff] %vm1008_vm3, %v687_v47  ;;  %1032 = vst.msk [vmem:[%s1776_s24 + $0xb8] sm:$0xff] %vm1008_vm3, %v1003_v48 }
 0x127   : > { %1029 = vst.msk [vmem:[%s1776_s24 + $0xa0] sm:$0xff] %vm1008_vm3, %v686_v51  ;;  %1031 = vst.msk [vmem:[%s1776_s24 + $0xb0] sm:$0xff] %vm1008_vm3, %v1002_v52  ;;  %v1341_v53 = vpop.f32.mrb[12].mxu0  ;;  %v1393_v54 = vpop.f32.mrb[12].mxu1 }
 0x128   : > { %v689_v55 = vadd.f32 %v1341_v53, %v1771_v4  ;;  %v1005_v56 = vadd.f32 %v1393_v54, %v1771_v4  ;;  %v657_v57 = vpop.f32.mrb[13].mxu0  ;;  %v973_v58 = vpop.f32.mrb[13].mxu1 }
 0x129   : > { %v688_v59 = vadd.f32 %v1771_v4, %v657_v57  ;;  %v1004_v60 = vadd.f32 %v1771_v4, %v973_v58 }
 0x12a   : > { %1034 = vst.msk [vmem:[%s1776_s24 + $0xc8] sm:$0xff] %vm1008_vm3, %v689_v55  ;;  %1036 = vst.msk [vmem:[%s1776_s24 + $0xd8] sm:$0xff] %vm1008_vm3, %v1005_v56 }
 0x12b   : > { %1033 = vst.msk [vmem:[%s1776_s24 + $0xc0] sm:$0xff] %vm1008_vm3, %v688_v59  ;;  %1035 = vst.msk [vmem:[%s1776_s24 + $0xd0] sm:$0xff] %vm1008_vm3, %v1004_v60  ;;  %v1344_v61 = vpop.f32.mrb[14].mxu0  ;;  %v1396_v62 = vpop.f32.mrb[14].mxu1 }
 0x12c   : > { %v691_v63 = vadd.f32 %v1344_v61, %v1771_v4  ;;  %v1007_v0 = vadd.f32 %v1396_v62, %v1771_v4  ;;  %v667_v1 = vpop.f32.mrb[15].mxu0  ;;  %v983_v2 = vpop.f32.mrb[15].mxu1 }
 0x12d   : > { %v690_v3 = vadd.f32 %v1771_v4, %v667_v1  ;;  %v1006_v5 = vadd.f32 %v1771_v4, %v983_v2 }
 0x12e   : > { %1038 = vst.msk [vmem:[%s1776_s24 + $0xe8] sm:$0xff] %vm1008_vm3, %v691_v63  ;;  %1040 = vst.msk [vmem:[%s1776_s24 + $0xf8] sm:$0xff] %vm1008_vm3, %v1007_v0 }
 0x12f   : > { %1037 = vst.msk [vmem:[%s1776_s24 + $0xe0] sm:$0xff] %vm1008_vm3, %v690_v3  ;;  %1039 = vst.msk [vmem:[%s1776_s24 + $0xf0] sm:$0xff] %vm1008_vm3, %v1006_v5 }
 0x130 PF: > { %s13_s16 = sadd.s32 1, %s1509_s16   ;;  %s1893_s12 = smov %s1501_s14 }
 0x131   : > { %p10_p8 = scmp.ge.s32.totalorder %s13_s16, 6   ;;  %s1894_s13 = smov %s1505_s15 }
 0x132   : > { %s1895_s14 = smov %s1898_s17  ;;  %s1896_s15 = smov %s1902_s18 }
 0x133   :  { %12 = sbr.rel (!%p10_p8) target bundleno = 3 (0x3), region = 65 }

</bundles_post_ra>
